<compile_context>
chip_gen: v6e
topology: v6e:2x2x1
jax: 0.10.0
libtpu: 0.0.40
codegen_flags: <defaults>
</compile_context>

<pallas_src>
import functools

import jax
import jax.numpy as jnp
from jax.experimental import pallas as pl
from jax.experimental.pallas import tpu as pltpu


def _round_up(n, m):
    return ((n + m - 1) // m) * m


def mlp_kernel(x_ref, w1_ref, b1_ref, w2_ref, b2_ref, w3_ref, b3_ref, o_ref):
    """relu(relu(x@W1+b1)@W2+b2)@W3+b3 for one batch tile (all layers fused)."""
    # Matmuls run in the weights' dtype (f32 or bf16) with f32 accumulation on
    # the MXU; bias-add / ReLU stay in f32.
    x = x_ref[...].astype(w1_ref.dtype)

    h1 = jnp.dot(x, w1_ref[...], preferred_element_type=jnp.float32)
    h1 = jnp.maximum(h1 + b1_ref[...], 0.0)

    h2 = jnp.dot(h1.astype(w2_ref.dtype), w2_ref[...],
                 preferred_element_type=jnp.float32)
    h2 = jnp.maximum(h2 + b2_ref[...], 0.0)

    y = jnp.dot(h2.astype(w3_ref.dtype), w3_ref[...],
                preferred_element_type=jnp.float32)
    o_ref[...] = (y + b3_ref[...]).astype(o_ref.dtype)


def mlp_forward(x, params, *, batch_tile=None, matmul_dtype=None):
    """params = (w1, b1, w2, b2, w3, b3); wI shaped (in, out), bI shaped (1, out).

    matmul_dtype: optionally bf16 for the matmul operands (weights are cast once
    here, activations in-kernel); accumulation and elementwise math stay f32.
    """
    w1, b1, w2, b2, w3, b3 = params
    B, in_dim = x.shape
    out_dim = w3.shape[1]

    if matmul_dtype is not None:
        w1, w2, w3 = (w.astype(matmul_dtype) for w in (w1, w2, w3))

    # ---- Batch tiling -----------------------------------------------------
    # Tiny batches: single block (no pipeline / padding overhead at all).
    # Larger batches: ~B/2-row tiles rounded up to 128 (>= 2 grid steps so the
    # "parallel" axis can shard across v7x's two TensorCores), capped at 8192
    # rows to stay comfortably inside scoped VMEM on all generations.
    if batch_tile is None:
        if B <= 128:
            batch_tile = max(_round_up(B, 8), 8)
        else:
            batch_tile = min(8192, _round_up(-(-B // 2), 128))

    B_pad = _round_up(B, batch_tile)
    if B_pad != B:
        x = jnp.pad(x, ((0, B_pad - B), (0, 0)))

    grid = (B_pad // batch_tile,)

    in_specs = [
        # x tile: last dim equals the full array dim (32) -> no lane padding.
        pl.BlockSpec((batch_tile, in_dim), lambda i: (i, 0)),
        pl.BlockSpec(w1.shape, lambda i: (0, 0)),   # W1 (resident)
        pl.BlockSpec(b1.shape, lambda i: (0, 0)),   # b1
        pl.BlockSpec(w2.shape, lambda i: (0, 0)),   # W2
        pl.BlockSpec(b2.shape, lambda i: (0, 0)),   # b2
        pl.BlockSpec(w3.shape, lambda i: (0, 0)),   # W3
        pl.BlockSpec(b3.shape, lambda i: (0, 0)),   # b3
    ]
    # Output block last dim = full array dim (out_dim=8). A masked store of 8
    # lanes moves 16x fewer bytes than padding to 128 and slicing back.
    out_spec = pl.BlockSpec((batch_tile, out_dim), lambda i: (i, 0))

    out = pl.pallas_call(
        mlp_kernel,
        out_shape=jax.ShapeDtypeStruct((B_pad, out_dim), x.dtype),
        grid_spec=pltpu.PrefetchScalarGridSpec(
            num_scalar_prefetch=0,
            grid=grid,
            in_specs=in_specs,
            out_specs=out_spec,
        ),
        compiler_params=pltpu.CompilerParams(
            dimension_semantics=("parallel",),
            vmem_limit_bytes=32 * 1024 * 1024,  # ~10 MiB used at 8192-row cap
        ),
    )(x, w1, b1, w2, b2, w3, b3)

    # Strip batch padding only (no output-lane padding anymore).  Under jit the
    # slice fuses with the consumer.
    if B_pad != B:
        out = out[:B]
    return out


def init_params(key, input_size, output_size):
    """Deterministic init matching torch.nn.Linear's U(-1/sqrt(fan_in), 1/sqrt(fan_in))."""
    dims = [(input_size, 128), (128, 64), (64, output_size)]
    params = []
    for (fan_in, fan_out) in dims:
        key, kw, kb = jax.random.split(key, 3)
        bound = 1.0 / jnp.sqrt(fan_in)
        w = jax.random.uniform(kw, (fan_in, fan_out), jnp.float32, -bound, bound)
        b = jax.random.uniform(kb, (1, fan_out), jnp.float32, -bound, bound)
        params.extend([w, b])
    return tuple(params)


def reference_forward(x, params):
    w1, b1, w2, b2, w3, b3 = params
    h1 = jnp.maximum(x @ w1 + b1, 0.0)
    h2 = jnp.maximum(h1 @ w2 + b2, 0.0)
    return h2 @ w3 + b3


if __name__ == "__main__":
    key = jax.random.PRNGKey(0)
    kx, kp, kx2 = jax.random.split(key, 3)

    batch, input_size, output_size = 8, 32, 8
    params = init_params(kp, input_size, output_size)

    # Jit the wrapper so any wrapper-side pad/slice fuses with neighbors and
    # dispatch overhead is amortized (per review, tiny-batch path).
    mlp_f32 = jax.jit(mlp_forward)
    mlp_bf16 = jax.jit(functools.partial(mlp_forward, matmul_dtype=jnp.bfloat16))

    # Small-batch path: single block, no padding, no slicing.
    x = jax.random.normal(kx, (batch, input_size), jnp.float32)
    out = jax.block_until_ready(mlp_f32(x, params))
    ref = reference_forward(x, params)
    assert out.shape == (batch, output_size)
    assert jnp.allclose(out, ref, atol=1e-5, rtol=1e-5), "mismatch vs reference (small batch)"

    # Larger, non-divisible batch: 2 parallel grid steps of 384 rows (v7x gets
    # both TensorCores), batch padding stripped at the end.
    big_batch = 600
    x2 = jax.random.normal(kx2, (big_batch, input_size), jnp.float32)
    out2 = jax.block_until_ready(mlp_f32(x2, params))
    ref2 = reference_forward(x2, params)
    assert out2.shape == (big_batch, output_size)
    assert jnp.allclose(out2, ref2, atol=1e-4, rtol=1e-4), "mismatch vs reference (large batch)"

    # Optional bf16 matmul-operand path (f32 accumulation): loose tolerance.
    out3 = jax.block_until_ready(mlp_bf16(x2, params))
    assert out3.shape == (big_batch, output_size)
    assert jnp.allclose(out3, ref2, atol=1e-1, rtol=1e-1), "mismatch vs reference (bf16 matmuls)"

    print("KERNEL_OK")
</pallas_src>

<mosaic_0001>
module attributes {stable_mosaic.version = 11 : i64} {
  func.func @mlp_kernel(%arg0: i32, %arg1: memref<8x32xf32, #tpu.memory_space<vmem>>, %arg2: memref<32x128xf32, #tpu.memory_space<vmem>>, %arg3: memref<1x128xf32, #tpu.memory_space<vmem>>, %arg4: memref<128x64xf32, #tpu.memory_space<vmem>>, %arg5: memref<1x64xf32, #tpu.memory_space<vmem>>, %arg6: memref<64x8xf32, #tpu.memory_space<vmem>>, %arg7: memref<1x8xf32, #tpu.memory_space<vmem>>, %arg8: memref<8x8xf32, #tpu.memory_space<vmem>>) attributes {dimension_semantics = [#tpu.dimension_semantics<parallel>], iteration_bounds = array<i64: 1>, scalar_prefetch = 0 : i64, scratch_operands = 0 : i64, tpu.core_type = #tpu.core_type<tc>, window_params = [{transform_indices = @transform_0, window_bounds = array<i64: 8, 32>}, {pipeline_mode = #tpu.pipeline_mode<synchronous>, transform_indices = @transform_1, window_bounds = array<i64: 32, 128>}, {pipeline_mode = #tpu.pipeline_mode<synchronous>, transform_indices = @transform_2, window_bounds = array<i64: 1, 128>}, {pipeline_mode = #tpu.pipeline_mode<synchronous>, transform_indices = @transform_3, window_bounds = array<i64: 128, 64>}, {pipeline_mode = #tpu.pipeline_mode<synchronous>, transform_indices = @transform_4, window_bounds = array<i64: 1, 64>}, {pipeline_mode = #tpu.pipeline_mode<synchronous>, transform_indices = @transform_5, window_bounds = array<i64: 64, 8>}, {pipeline_mode = #tpu.pipeline_mode<synchronous>, transform_indices = @transform_6, window_bounds = array<i64: 1, 8>}, {transform_indices = @transform_7, window_bounds = array<i64: 8, 8>}]} {
    %c0 = arith.constant 0 : index
    %c0_0 = arith.constant 0 : index
    %0 = vector.load %arg1[%c0, %c0_0] : memref<8x32xf32, #tpu.memory_space<vmem>>, vector<8x32xf32>
    %c0_1 = arith.constant 0 : index
    %c0_2 = arith.constant 0 : index
    %1 = vector.load %arg2[%c0_1, %c0_2] : memref<32x128xf32, #tpu.memory_space<vmem>>, vector<32x128xf32>
    %cst = arith.constant dense<0.000000e+00> : vector<8x128xf32>
    %2 = tpu.matmul %0, %1, %cst {dimension_numbers = #tpu.dot_dimension_numbers<[1], [0], [0], [1], [0, 0, 1, 1], [], []>} : vector<8x32xf32>, vector<32x128xf32>, vector<8x128xf32> -> vector<8x128xf32>
    %c0_3 = arith.constant 0 : index
    %c0_4 = arith.constant 0 : index
    %3 = vector.load %arg3[%c0_3, %c0_4] : memref<1x128xf32, #tpu.memory_space<vmem>>, vector<1x128xf32>
    %4 = vector.broadcast %3 : vector<1x128xf32> to vector<8x128xf32>
    %5 = arith.addf %2, %4 : vector<8x128xf32>
    %cst_5 = arith.constant 0.000000e+00 : f32
    %6 = vector.broadcast %cst_5 : f32 to vector<8x128xf32>
    %7 = arith.maximumf %5, %6 : vector<8x128xf32>
    %c0_6 = arith.constant 0 : index
    %c0_7 = arith.constant 0 : index
    %8 = vector.load %arg4[%c0_6, %c0_7] : memref<128x64xf32, #tpu.memory_space<vmem>>, vector<128x64xf32>
    %cst_8 = arith.constant dense<0.000000e+00> : vector<8x64xf32>
    %9 = tpu.matmul %7, %8, %cst_8 {dimension_numbers = #tpu.dot_dimension_numbers<[1], [0], [0], [1], [0, 0, 1, 1], [], []>} : vector<8x128xf32>, vector<128x64xf32>, vector<8x64xf32> -> vector<8x64xf32>
    %c0_9 = arith.constant 0 : index
    %c0_10 = arith.constant 0 : index
    %10 = vector.load %arg5[%c0_9, %c0_10] : memref<1x64xf32, #tpu.memory_space<vmem>>, vector<1x64xf32>
    %11 = vector.broadcast %10 : vector<1x64xf32> to vector<8x64xf32>
    %12 = arith.addf %9, %11 : vector<8x64xf32>
    %cst_11 = arith.constant 0.000000e+00 : f32
    %13 = vector.broadcast %cst_11 : f32 to vector<8x64xf32>
    %14 = arith.maximumf %12, %13 : vector<8x64xf32>
    %c0_12 = arith.constant 0 : index
    %c0_13 = arith.constant 0 : index
    %15 = vector.load %arg6[%c0_12, %c0_13] : memref<64x8xf32, #tpu.memory_space<vmem>>, vector<64x8xf32>
    %cst_14 = arith.constant dense<0.000000e+00> : vector<8x8xf32>
    %16 = tpu.matmul %14, %15, %cst_14 {dimension_numbers = #tpu.dot_dimension_numbers<[1], [0], [0], [1], [0, 0, 1, 1], [], []>} : vector<8x64xf32>, vector<64x8xf32>, vector<8x8xf32> -> vector<8x8xf32>
    %c0_15 = arith.constant 0 : index
    %c0_16 = arith.constant 0 : index
    %17 = vector.load %arg7[%c0_15, %c0_16] : memref<1x8xf32, #tpu.memory_space<vmem>>, vector<1x8xf32>
    %18 = vector.broadcast %17 : vector<1x8xf32> to vector<8x8xf32>
    %19 = arith.addf %16, %18 : vector<8x8xf32>
    %c0_17 = arith.constant 0 : index
    %c0_18 = arith.constant 0 : index
    %20 = vector.load %arg8[%c0_17, %c0_18] : memref<8x8xf32, #tpu.memory_space<vmem>>, vector<8x8xf32>
    tpu.vector_store %arg8[%c0_17, %c0_18], %19 {strides = array<i32>} : memref<8x8xf32, #tpu.memory_space<vmem>>, vector<8x8xf32>,
    return
  }
  func.func @transform_0(%arg0: i32) -> (i32, i32) {
    %c0_i32 = arith.constant 0 : i32
    %c0_i32_0 = arith.constant 0 : i32
    return %arg0, %c0_i32 : i32, i32
  }
  func.func @transform_1(%arg0: i32) -> (i32, i32) {
    %c0_i32 = arith.constant 0 : i32
    %c0_i32_0 = arith.constant 0 : i32
    %c0_i32_1 = arith.constant 0 : i32
    return %c0_i32, %c0_i32_0 : i32, i32
  }
  func.func @transform_2(%arg0: i32) -> (i32, i32) {
    %c0_i32 = arith.constant 0 : i32
    %c0_i32_0 = arith.constant 0 : i32
    %c0_i32_1 = arith.constant 0 : i32
    return %c0_i32, %c0_i32_0 : i32, i32
  }
  func.func @transform_3(%arg0: i32) -> (i32, i32) {
    %c0_i32 = arith.constant 0 : i32
    %c0_i32_0 = arith.constant 0 : i32
    %c0_i32_1 = arith.constant 0 : i32
    return %c0_i32, %c0_i32_0 : i32, i32
  }
  func.func @transform_4(%arg0: i32) -> (i32, i32) {
    %c0_i32 = arith.constant 0 : i32
    %c0_i32_0 = arith.constant 0 : i32
    %c0_i32_1 = arith.constant 0 : i32
    return %c0_i32, %c0_i32_0 : i32, i32
  }
  func.func @transform_5(%arg0: i32) -> (i32, i32) {
    %c0_i32 = arith.constant 0 : i32
    %c0_i32_0 = arith.constant 0 : i32
    %c0_i32_1 = arith.constant 0 : i32
    return %c0_i32, %c0_i32_0 : i32, i32
  }
  func.func @transform_6(%arg0: i32) -> (i32, i32) {
    %c0_i32 = arith.constant 0 : i32
    %c0_i32_0 = arith.constant 0 : i32
    %c0_i32_1 = arith.constant 0 : i32
    return %c0_i32, %c0_i32_0 : i32, i32
  }
  func.func @transform_7(%arg0: i32) -> (i32, i32) {
    %c0_i32 = arith.constant 0 : i32
    %c0_i32_0 = arith.constant 0 : i32
    return %arg0, %c0_i32 : i32, i32
  }
}

</mosaic_0001>

<bundles_post_ra>
// kernel: mlp_forward.1
= control target key start
LH: loop header
LB: loop body
LE: loop exit
PB: predicated region body
PF: predicated region fallthrough
CT: control target
= control target key end

     0   :  { %v439_v1 = vmov 0.0   ;;  %vm440_vm0 = vmmov 0   ;;  %vm39_vm1 = vcmask 261120   ;;  %s615_s0 = inlined_call_operand.vmem [shape: f32[8,32], index: 0, kind: input, shape index: {}]   ;;  %s616_s1 = inlined_call_operand.vmem [shape: f32[32,128], index: 1, kind: input, shape index: {}]   ;;  %s617_s2 = inlined_call_operand.vmem [shape: f32[1,128], index: 2, kind: input, shape index: {}]   ;;  %s618_s3 = inlined_call_operand.vmem [shape: f32[128,64], index: 3, kind: input, shape index: {}]   ;;  %s619_s4 = inlined_call_operand.vmem [shape: f32[1,64], index: 4, kind: input, shape index: {}]   ;;  %s620_s5 = inlined_call_operand.vmem [shape: f32[64,8], index: 5, kind: input, shape index: {}]   ;;  %s621_s6 = inlined_call_operand.vmem [shape: f32[1,8], index: 6, kind: input, shape index: {}]   ;;  %s622_s7 = inlined_call_operand.hbm [shape: f32[8,8], index: 7, kind: output, shape index: {}]  }
   0x1   :  { %v31_v0 = vld [vmem:[%s616_s1 + $0x18] sm:$0xff]  ;;  %349 = vmatprep.subr.mxu0 %v439_v1  ;;  %v30_v2 = vld [vmem:[%s616_s1 + $0x10] sm:$0xff]  ;;  %357 = vmatprep.mubr.msk.f32.mxu0 %vm440_vm0, %v439_v1  ;;  %v29_v5 = vld [vmem:[%s616_s1 + $0x8] sm:$0xff] }
   0x2   :  { %v129_v3 = vld [vmem:[%s618_s3 + $0x78] sm:$0xff]  ;;  %350 = vmatpush3.msra.mxu0 %v31_v0  ;;  %360 = vmatprep.subr.mxu1 %v439_v1  ;;  %v128_v4 = vld [vmem:[%s618_s3 + $0x70] sm:$0xff]  ;;  %v127_v6 = vld [vmem:[%s618_s3 + $0x68] sm:$0xff] }
   0x3   :  { %351 = vmatprep.subr.mxu0 %v439_v1  ;;  %361 = vmatpush3.msra.mxu1 %v129_v3  ;;  %v28_v7 = vld [vmem:[%s616_s1] sm:$0xff] }
   0x4   :  { %352 = vmatpush3.msra.mxu0 %v30_v2  ;;  %362 = vmatprep.subr.mxu1 %v439_v1  ;;  %v27_v8 = vld [vmem:[%s615_s0] sm:$0xff] }
   0x5   :  { %353 = vmatprep.subr.mxu0 %v439_v1  ;;  %363 = vmatpush3.msra.mxu1 %v128_v4  ;;  %v126_v9 = vld [vmem:[%s618_s3 + $0x60] sm:$0xff] }
   0x6   :  { %354 = vmatpush3.msra.mxu0 %v29_v5  ;;  %364 = vmatprep.subr.mxu1 %v439_v1 }
   0x7   :  { %12 = vsyncpa [#allocation3], 0  ;;  %355 = vmatprep.subr.mxu0 %v439_v1  ;;  %365 = vmatpush3.msra.mxu1 %v127_v6  ;;  %v125_v10 = vld [vmem:[%s618_s3 + $0x58] sm:$0xff]  ;;  %v124_v11 = vld [vmem:[%s618_s3 + $0x50] sm:$0xff]  ;;  %vm223_vm2 = vcmask 523264   ;;  %s441_s13 = smov [#allocation2]  }
   0x8   :  { %356 = vmatpush3.msra.mxu0 %v28_v7  ;;  %366 = vmatprep.subr.mxu1 %v439_v1  ;;  %v123_v12 = vld [vmem:[%s618_s3 + $0x48] sm:$0xff]  ;;  %v122_v13 = vld [vmem:[%s618_s3 + $0x40] sm:$0xff]  ;;  %v121_v14 = vld [vmem:[%s618_s3 + $0x38] sm:$0xff]  ;;  %s305_s14 = sshll.u32 %s441_s13, 4  ;;  %vm297_vm3 = vcmask 64512   ;;  %s306_s14 = int_to_ptr.vmem [resolvable:$true] %s305_s14 }
   0x9   :  { %358 = vmatmul.mubr.msk.f32.vlgmr.msra.gmra.mxu0 %vm39_vm1, %v27_v8  ;;  %367 = vmatpush3.msra.mxu1 %v126_v9  ;;  %v120_v15 = vld [vmem:[%s618_s3 + $0x30] sm:$0xff]  ;;  %v119_v16 = vld [vmem:[%s618_s3 + $0x28] sm:$0xff]  ;;  %v118_v17 = vld [vmem:[%s618_s3 + $0x20] sm:$0xff]  ;;  %p422_p1 = scmp.lt.s32.totalorder %s306_s14, %s306_s14 }
   0xa   :  { %368 = vmatprep.subr.mxu1 %v439_v1  ;;  %392 = vmatprep.mubr.msk.f32.mxu1 %vm440_vm0, %v439_v1  ;;  %v117_v18 = vld [vmem:[%s618_s3 + $0x18] sm:$0xff]  ;;  %v116_v19 = vld [vmem:[%s618_s3 + $0x10] sm:$0xff]  ;;  %v115_v20 = vld [vmem:[%s618_s3 + $0x8] sm:$0xff] }
   0xb   :  { %369 = vmatpush3.msra.mxu1 %v125_v10  ;;  %395 = vmatprep.subr.mxu0 %v439_v1  ;;  %v114_v21 = vld [vmem:[%s618_s3] sm:$0xff]  ;;  %v215_v22 = vld [vmem:[%s620_s5 + $0x38] sm:$0xff]  ;;  %v214_v23 = vld [vmem:[%s620_s5 + $0x30] sm:$0xff] }
   0xc   :  { %370 = vmatprep.subr.mxu1 %v439_v1  ;;  %411 = vmatprep.mubr.msk.f32.mxu0 %vm440_vm0, %v439_v1  ;;  %v213_v24 = vld [vmem:[%s620_s5 + $0x28] sm:$0xff]  ;;  %v212_v25 = vld [vmem:[%s620_s5 + $0x20] sm:$0xff]  ;;  %v211_v26 = vld [vmem:[%s620_s5 + $0x18] sm:$0xff] }
   0xd   :  { %371 = vmatpush3.msra.mxu1 %v124_v11  ;;  %396 = vmatpush3.msra.mxu0 %v215_v22  ;;  %v313_v27 = vld [vmem:[%s617_s2] ss:$0 sm:$0xff]  ;;  %v210_v32 = vld [vmem:[%s620_s5 + $0x10] sm:$0xff]  ;;  %v209_v33 = vld [vmem:[%s620_s5 + $0x8] sm:$0xff] }
   0xe   :  { %372 = vmatprep.subr.mxu1 %v439_v1  ;;  %397 = vmatprep.subr.mxu0 %v439_v1  ;;  %v208_v34 = vld [vmem:[%s620_s5] sm:$0xff]  ;;  %s417_s5 = scalar_lea.vmem %s306_s14, 128 }
   0xf   :  { %373 = vmatpush3.msra.mxu1 %v123_v12  ;;  %398 = vmatpush3.msra.mxu0 %v214_v23  ;;  %v315_v35 = vld [vmem:[%s619_s4] ss:$0 sm:$0xff]  ;;  %p418_p0 = scmp.ne.s32.totalorder %s306_s14, %s417_s5  ;;  %p423_p2 = scmp.lt.s32.totalorder %s417_s5, %s417_s5 }
  0x10   :  { %374 = vmatprep.subr.mxu1 %v439_v1  ;;  %399 = vmatprep.subr.mxu0 %v439_v1  ;;  %v316_v40 = vld [vmem:[%s621_s6] ss:$0 sm:$0xff] }
  0x11   :  { %375 = vmatpush3.msra.mxu1 %v122_v13  ;;  %400 = vmatpush3.msra.mxu0 %v213_v24  ;;  %p424_p3 = por %p423_p2, %p422_p1 }
  0x12   :  { %376 = vmatprep.subr.mxu1 %v439_v1  ;;  %401 = vmatprep.subr.mxu0 %v439_v1 }
  0x13   :  { %377 = vmatpush3.msra.mxu1 %v121_v14  ;;  %402 = vmatpush3.msra.mxu0 %v212_v25  ;;  %p425_p4 = pnand %p424_p3, %p418_p0 }
  0x14   :  { %378 = vmatprep.subr.mxu1 %v439_v1  ;;  %403 = vmatprep.subr.mxu0 %v439_v1 }
  0x15   :  { %379 = vmatpush3.msra.mxu1 %v120_v15  ;;  %404 = vmatpush3.msra.mxu0 %v211_v26 }
  0x16   :  { %380 = vmatprep.subr.mxu1 %v439_v1  ;;  %405 = vmatprep.subr.mxu0 %v439_v1 }
  0x17   :  { %381 = vmatpush3.msra.mxu1 %v119_v16  ;;  %406 = vmatpush3.msra.mxu0 %v210_v32 }
  0x18   :  { %382 = vmatprep.subr.mxu1 %v439_v1  ;;  %407 = vmatprep.subr.mxu0 %v439_v1 }
  0x19   :  { %383 = vmatpush3.msra.mxu1 %v118_v17  ;;  %408 = vmatpush3.msra.mxu0 %v209_v33 }
  0x1a   :  { %384 = vmatprep.subr.mxu1 %v439_v1  ;;  %409 = vmatprep.subr.mxu0 %v439_v1 }
  0x1b   :  { %385 = vmatpush3.msra.mxu1 %v117_v18  ;;  %410 = vmatpush3.msra.mxu0 %v208_v34 }
  0x1c   :  { %386 = vmatprep.subr.mxu1 %v439_v1 }
  0x1d   :  { %387 = vmatpush3.msra.mxu1 %v116_v19 }
  0x1e   :  { %388 = vmatprep.subr.mxu1 %v439_v1 }
  0x1f   :  { %389 = vmatpush3.msra.mxu1 %v115_v20 }
  0x20   :  { %390 = vmatprep.subr.mxu1 %v439_v1 }
  0x21   :  { %391 = vmatpush3.msra.mxu1 %v114_v21 }
  0xc9   :  { %v109_v28 = vpop.f32.mrf.mxu0 }
  0xca   :  { %v110_v29 = vadd.f32 %v313_v27, %v109_v28 }
  0xcb   :  { %v359_v30 = vpop.f32.mrf.mxu0 }
  0xcc   :  { %v113_v31 = vmax.f32 %v110_v29, 0.0 }
  0xce   :  { %393 = vmatmul.mubr.f32.vlgmr.msra.gmra.mxu1 %v113_v31 }
 0x18e   :  { %v203_v36 = vpop.f32.mrf.mxu1 }
 0x18f   :  { %v204_v37 = vadd.f32 %v315_v35, %v203_v36 }
 0x190   :  { %v394_v38 = vpop.f32.mrf.mxu1 }
 0x191   :  { %v207_v39 = vmax.f32 %v204_v37, 0.0 }
 0x193   :  { %412 = vmatmul.mubr.msk.f32.vlgmr.msra.gmra.mxu0 %vm223_vm2, %v207_v39 }
 0x253   :  { %v293_v41 = vpop.f32.mrf.mxu0 }
 0x254   :  { %v294_v42 = vadd.f32 %v316_v40, %v293_v41 }
 0x255   :  { %v413_v43 = vpop.f32.mrf.mxu0 }
 0x256   :  { %298 = vst.msk [vmem:[#allocation2] sm:$0xff] %vm297_vm3, %v294_v42 }
 0x257   :  { %428 = shalt.err (!%p425_p4)
}
 0x258   :  { %308 = dma.vmem_to_hbm [thread:$0]  %s306_s14, 128, %s622_s7, [#allocation3]  }
 0x259   :  { %437 = dma.done.wait [#allocation3], 128  }
 0x25a   :  { %438 = vsyncadd [#allocation3], 4294967168 }
 0x25b   :  { %312 = vsyncpa [#allocation3], 1 }

</bundles_post_ra>
